<compile_context>
chip_gen: v7x
topology: tpu7x:2x2x1
jax: 0.10.0
libtpu: 0.0.40
codegen_flags: <defaults>
</compile_context>

<pallas_src>
import functools
from math import sqrt, ceil, log

import numpy as np
import jax
import jax.numpy as jnp
from jax import lax
from jax.experimental import pallas as pl
from jax.experimental.pallas import tpu as pltpu

NEG_INF = -1e30  # finite stand-in for -inf (exp underflows to exactly 0)


def _vmem_capacity_bytes():
    try:
        return int(pltpu.get_tpu_info().vmem_capacity_bytes)
    except Exception:  # hardware query unavailable -> assume the smallest (v7x) VMEM
        return 64 * 1024 * 1024


def _vmem_limit(block_bytes, cap):
    """Explicit scoped-VMEM limit: ~2x headroom over the block estimate, >= 32 MiB,
    always below physical capacity."""
    want = max(2 * int(block_bytes), 32 * 1024 * 1024)
    return int(min(want, cap - 4 * 1024 * 1024))


def _pick_group(bh, d, l_q, l_k, u_pad, vmem_cap):
    """Head-group size G.

    Prefer the SMALLEST G with lane-dense G*D (multiple of 128): dense stores while keeping
    NG = B*H/G (the parallel grid axis) maximal for megacore/v7x.  Candidates are rejected
    if kernel 2's per-step working set would not fit comfortably in VMEM.
    """
    def fits(g):
        gd = g * d
        dma = 2 * ((u_pad + 2 * l_k) * gd * 2 + u_pad * g * 4 + l_q * gd * 4)
        work = (l_q * l_k * 2 + 2 * l_q * gd * 4            # tril + ctx0 + select
                + 4 * u_pad * l_k * 4                       # per-head scores / exp
                + g * u_pad * (l_q + 4 * gd) * 4            # onehot + block-diag rhs_aug
                + l_q * 2 * gd * 4)                         # fused scatter result
        return dma + work < 0.5 * vmem_cap

    divisors = [g for g in range(1, bh + 1) if bh % g == 0]
    lane_dense = [g for g in divisors if (g * d) % 128 == 0 and fits(g)]
    if lane_dense:
        return lane_dense[0]
    fitting = [g for g in divisors if g * d <= 512 and fits(g)]
    return fitting[-1] if fitting else 1


# ---------------------------------------------------------------------------
# Kernel 1: sparsity metric  M_q = max_{sampled k}(q.k) - (1/L_K) sum_{sampled}(q.k)
# grid = (NG, KT): NG head-groups (parallel) x KT tiles of L_K (arbitrary reduction).
# ---------------------------------------------------------------------------
def _probe_kernel(q_ref, k_ref, cnt_ref, m_ref, mx_sc, sm_sc, *, G, D, L_K):
    kt = pl.program_id(1)

    @pl.when(kt == 0)
    def _():
        mx_sc[...] = jnp.full_like(mx_sc, NEG_INF)
        sm_sc[...] = jnp.zeros_like(sm_sc)

    q = q_ref[0]                                  # (L_Q, G*D) bf16
    k = k_ref[0]                                  # (TK,  G*D) bf16
    cnt = cnt_ref[...].astype(jnp.float32)        # (TK, L_Q) sample multiplicity (transposed)
    pres = cnt > 0.0                              # presence mask derived in-kernel
    mx_rows, sm_rows = [], []
    for h in range(G):                            # small static head loop
        lo = h * D
        qh = q[:, lo:lo + D]                      # (L_Q, D)
        kh = k[:, lo:lo + D]                      # (TK,  D)
        # K @ Q^T so the reduction is over sublanes and M stays lanes-major.
        qk_t = lax.dot_general(kh, qh, (((1,), (1,)), ((), ())),
                               preferred_element_type=jnp.float32)            # (TK, L_Q)
        mx_rows.append(jnp.max(jnp.where(pres, qk_t, NEG_INF), axis=0, keepdims=True))
        sm_rows.append(jnp.sum(qk_t * cnt, axis=0, keepdims=True))
    mx_sc[...] = jnp.maximum(mx_sc[...], jnp.concatenate(mx_rows, axis=1))    # (1, G*L_Q)
    sm_sc[...] = sm_sc[...] + jnp.concatenate(sm_rows, axis=1)

    @pl.when(kt == pl.num_programs(1) - 1)
    def _():
        m_ref[0] = mx_sc[...] - sm_sc[...] / float(L_K)       # lane-dense (1, G*L_Q) store


# ---------------------------------------------------------------------------
# Kernel 2: ProbMask-ed softmax attention for the selected queries, in-kernel cumsum(V)
# initial context (tril-ones matmul on the resident V slab), and a single fused one-hot
# scatter matmul producing the lane-dense (L_Q, G*D) context.
# ---------------------------------------------------------------------------
def _context_kernel(qr_ref, k_ref, v_ref, idx_ref, ctx_ref, *, G, D, scale):
    qr = qr_ref[0]                                # (u_pad, G*D) bf16
    k = k_ref[0]                                  # (L_K,  G*D) bf16
    v = v_ref[0]                                  # (L_K,  G*D) bf16
    idx = idx_ref[0]                              # (u_pad, G)  int32 selected query rows
    u_pad, L_K = qr.shape[0], k.shape[0]
    L_Q, GD = ctx_ref.shape[1], G * D

    # Initial context cumsum(V): one tril-ones MXU matmul (removes the f32 ctx0 operand).
    tril = (lax.broadcasted_iota(jnp.int32, (L_Q, L_K), 1)
            <= lax.broadcasted_iota(jnp.int32, (L_Q, L_K), 0)).astype(jnp.bfloat16)
    ctx0 = jnp.dot(tril, v, preferred_element_type=jnp.float32)               # (L_Q, GD)

    kpos = lax.broadcasted_iota(jnp.int32, (u_pad, L_K), 1)
    lpos = lax.broadcasted_iota(jnp.int32, (u_pad, L_Q), 1)

    outs, onehots = [], []
    for h in range(G):                            # small static head loop
        lo = h * D
        qh, kh, vh = qr[:, lo:lo + D], k[:, lo:lo + D], v[:, lo:lo + D]
        ih = idx[:, h:h + 1]                      # (u_pad, 1)

        s = lax.dot_general(qh, kh, (((1,), (1,)), ((), ())),
                            preferred_element_type=jnp.float32) * scale       # (u_pad, L_K)
        s = jnp.where(kpos > ih, NEG_INF, s)      # ProbMask: causal for the selected rows
        m = jnp.max(s, axis=-1, keepdims=True)    # f32 softmax
        e = jnp.exp(s - m)
        attn = e * pl.reciprocal(jnp.sum(e, axis=-1, keepdims=True), approx=True)
        outs.append(jnp.dot(attn.astype(jnp.bfloat16), vh,
                            preferred_element_type=jnp.float32))               # (u_pad, D)
        onehots.append((lpos == ih).astype(jnp.float32))                       # (u_pad, L_Q)

    # Fused scatter: ONE dot_general with K = G*u_pad.  RHS = block-diagonal per-head
    # outputs with a block-diagonal ones indicator appended along lanes, so the single
    # MXU pass yields both the scattered rows and the "row was updated" mask, lane-dense.
    onehot_all = jnp.concatenate(onehots, axis=0)                              # (G*u_pad, L_Q)
    zero_blk = jnp.zeros((u_pad, D), jnp.float32)
    rows = []
    for h in range(G):
        blocks = [zero_blk] * G
        blocks[h] = outs[h]
        rows.append(jnp.concatenate(blocks, axis=1))
    rhs = jnp.concatenate(rows, axis=0)                                        # (G*u_pad, GD)
    ind = (lax.broadcasted_iota(jnp.int32, (G * u_pad, GD), 0) // u_pad
           == lax.broadcasted_iota(jnp.int32, (G * u_pad, GD), 1) // D).astype(jnp.float32)
    res = lax.dot_general(onehot_all, jnp.concatenate([rhs, ind], axis=1),
                          (((0,), (0,)), ((), ())),
                          preferred_element_type=jnp.float32)                  # (L_Q, 2*GD)
    scat, sel = res[:, :GD], res[:, GD:]
    ctx_ref[0] = jnp.where(sel > 0.0, scat, ctx0).astype(ctx_ref.dtype)        # dense store


# ---------------------------------------------------------------------------
# Wrapper (matches ProbAttention.forward with mask_flag=True, output_attn=False)
# ---------------------------------------------------------------------------
def prob_attention(queries, keys, values, attn_mask=None, *, sample_key,
                   factor=5, scale=None, output_attn=False):
    # NOTE: nn.Dropout in the PyTorch __init__ is never applied in forward().
    # TODO(synk): output_attn=True (dense L_V x L_V attention map) and the
    #             mask_flag=False mean-initial-context path are not implemented.
    B, L_Q, H, D = queries.shape
    _, L_K, _, _ = keys.shape
    assert L_Q == L_K, "mask_flag=True path requires L_Q == L_V"
    BH = B * H

    U_part = min(factor * int(ceil(log(L_K))), L_K)            # sample_k
    u = min(factor * int(ceil(log(L_Q))), L_Q)                 # n_top
    u_pad = -(-u // 8) * 8                                     # sublane-aligned n_top
    assert U_part <= 256, "bf16 sample counts stay exact only up to 256"

    vmem_cap = _vmem_capacity_bytes()
    G = _pick_group(BH, D, L_Q, L_K, u_pad, vmem_cap)
    NG = BH // G
    GD = G * D

    # bf16 BEFORE the relayouts: the (B,L,H,D) -> (NG,L,G*D) slab transposes are pure
    # HBM<->HBM copies; halving their bytes is a direct end-to-end win.
    qb = jnp.transpose(queries.astype(jnp.bfloat16), (0, 2, 1, 3)).reshape(BH, L_Q, D)
    kb = jnp.transpose(keys.astype(jnp.bfloat16), (0, 2, 1, 3)).reshape(BH, L_K, D)
    vb = jnp.transpose(values.astype(jnp.bfloat16), (0, 2, 1, 3)).reshape(BH, L_K, D)

    def to_slab(x):                                            # (BH, L, D) -> (NG, L, G*D)
        L = x.shape[1]
        return x.reshape(NG, G, L, D).transpose(0, 2, 1, 3).reshape(NG, L, GD)

    q_slab, k_slab, v_slab = to_slab(qb), to_slab(kb), to_slab(vb)

    # Sample multiplicities via scatter-add (no (L_Q, U_part, L_K) one-hot tensor in XLA).
    index_sample = jax.random.randint(sample_key, (L_Q, U_part), 0, L_K)
    cnt_t = (jnp.zeros((L_K, L_Q), jnp.float32)
             .at[index_sample, jnp.arange(L_Q)[:, None]].add(1.0)
             .astype(jnp.bfloat16))                            # (L_K, L_Q), exact small ints

    # L_K reduction tiling for kernel 1 (keeps (TK, L_Q) tiles in VMEM, not (L_K, L_Q)).
    TK = L_K if (L_K <= 512 or L_K % 512) else 512
    KT = L_K // TK

    # ---- kernel 1: sparsity metric M per query ----
    k1_bytes = (2 * ((L_Q + TK) * GD * 2 + TK * L_Q * 2 + G * L_Q * 4)
                + 2 * G * L_Q * 4 + 4 * TK * L_Q * 4)
    M = pl.pallas_call(
        functools.partial(_probe_kernel, G=G, D=D, L_K=L_K),
        out_shape=jax.ShapeDtypeStruct((NG, 1, G * L_Q), jnp.float32),
        grid=(NG, KT),
        in_specs=[pl.BlockSpec((1, L_Q, GD), lambda b, kt: (b, 0, 0)),
                  pl.BlockSpec((1, TK, GD), lambda b, kt: (b, kt, 0)),
                  pl.BlockSpec((TK, L_Q), lambda b, kt: (kt, 0))],
        out_specs=pl.BlockSpec((1, 1, G * L_Q), lambda b, kt: (b, 0, 0)),
        scratch_shapes=[pltpu.VMEM((1, G * L_Q), jnp.float32),
                        pltpu.VMEM((1, G * L_Q), jnp.float32)],
        compiler_params=pltpu.CompilerParams(
            dimension_semantics=("parallel", "arbitrary"),
            vmem_limit_bytes=_vmem_limit(k1_bytes, vmem_cap)),
    )(q_slab, k_slab, cnt_t)
    # TODO(synk): for very long sequences, replace the dense O(L^2*D) probe with one built
    #             around a gathered (L_Q, U_part, D) K_sample (scalar-prefetch DMA gather).

    # top-k selection (index set matches torch.topk(sorted=False) up to tie-breaking)
    _, idx = lax.top_k(M.reshape(BH, L_Q), u)                  # (BH, u) int32
    if u_pad > u:                                              # pad rows use idx = L_Q:
        pad = jnp.full((BH, u_pad - u), L_Q, jnp.int32)        # never fully masked, never scattered
        idx = jnp.concatenate([idx, pad], axis=1)
    q_red = jnp.take_along_axis(qb, jnp.minimum(idx, L_Q - 1)[..., None], axis=1)
    qr_slab = to_slab(q_red)                                   # (NG, u_pad, G*D) bf16
    idx_g = idx.reshape(NG, G, u_pad).transpose(0, 2, 1)       # (NG, u_pad, G)

    sc = float(scale) if scale is not None else 1.0 / sqrt(D)

    # ---- kernel 2: masked attention for selected rows + in-kernel cumsum(V) + scatter ----
    k2_bytes = (2 * ((u_pad + 2 * L_K) * GD * 2 + u_pad * G * 4 + L_Q * GD * 4)
                + L_Q * L_K * 2 + 2 * L_Q * GD * 4 + 4 * u_pad * L_K * 4
                + G * u_pad * (L_Q + 4 * GD) * 4 + L_Q * 2 * GD * 4)
    ctx = pl.pallas_call(
        functools.partial(_context_kernel, G=G, D=D, scale=sc),
        out_shape=jax.ShapeDtypeStruct((NG, L_Q, GD), jnp.float32),
        grid=(NG,),
        in_specs=[pl.BlockSpec((1, u_pad, GD), lambda b: (b, 0, 0)),
                  pl.BlockSpec((1, L_K, GD), lambda b: (b, 0, 0)),
                  pl.BlockSpec((1, L_K, GD), lambda b: (b, 0, 0)),
                  pl.BlockSpec((1, u_pad, G), lambda b: (b, 0, 0))],
        out_specs=pl.BlockSpec((1, L_Q, GD), lambda b: (b, 0, 0)),
        compiler_params=pltpu.CompilerParams(
            dimension_semantics=("parallel",),
            vmem_limit_bytes=_vmem_limit(k2_bytes, vmem_cap)),
    )(qr_slab, k_slab, v_slab, idx_g)
    # TODO(synk): when NG is very small, add an extra parallel L_Q-tile axis to kernel 2
    #             (and an online-softmax L_K tile) so both v7x TensorCores keep pipelining.

    ctx = (ctx.reshape(NG, L_Q, G, D).transpose(0, 2, 1, 3)
              .reshape(B, H, L_Q, D).transpose(0, 2, 1, 3))    # (B, L_Q, H, D)
    return ctx, None


# ---------------------------------------------------------------------------
# Pure-JAX reference (mirrors the PyTorch forward); matmul/cumsum inputs are rounded to
# bf16 to match the kernel's MXU input precision (f32 accumulation everywhere).
# ---------------------------------------------------------------------------
def prob_attention_ref(queries, keys, values, *, sample_key, factor=5, scale=None):
    B, L_Q, H, D = queries.shape
    _, L_K, _, _ = keys.shape
    q = jnp.transpose(queries, (0, 2, 1, 3)).astype(jnp.float32)
    k = jnp.transpose(keys, (0, 2, 1, 3)).astype(jnp.float32)
    v = jnp.transpose(values, (0, 2, 1, 3)).astype(jnp.float32)
    qb = q.astype(jnp.bfloat16).astype(jnp.float32)
    kb = k.astype(jnp.bfloat16).astype(jnp.float32)
    vb = v.astype(jnp.bfloat16).astype(jnp.float32)

    U_part = min(factor * int(ceil(log(L_K))), L_K)
    u = min(factor * int(ceil(log(L_Q))), L_Q)
    index_sample = jax.random.randint(sample_key, (L_Q, U_part), 0, L_K)
    K_sample = kb[:, :, index_sample, :]                                        # (B,H,L_Q,U,D)
    Q_K_sample = jnp.einsum('bhqd,bhqsd->bhqs', qb, K_sample, precision='highest')
    M = Q_K_sample.max(-1) - Q_K_sample.sum(-1) / L_K
    _, idx = lax.top_k(M, u)                                                    # (B,H,u)
    q_reduce = jnp.take_along_axis(qb, idx[..., None], axis=2)
    sc = float(scale) if scale is not None else 1.0 / sqrt(D)
    scores = jnp.einsum('bhud,bhkd->bhuk', q_reduce, kb, precision='highest') * sc
    kpos = jnp.arange(L_K)[None, None, None, :]
    scores = jnp.where(kpos > idx[..., None], -jnp.inf, scores)
    attn = jax.nn.softmax(scores, axis=-1)
    attn = attn.astype(jnp.bfloat16).astype(jnp.float32)    # kernel feeds attn to the MXU in bf16
    out = jnp.einsum('bhuk,bhkd->bhud', attn, vb, precision='highest')
    ctx = jnp.cumsum(vb, axis=2)                            # kernel builds ctx from the bf16 V slab
    bidx = jnp.arange(B)[:, None, None]
    hidx = jnp.arange(H)[None, :, None]
    ctx = ctx.at[bidx, hidx, idx].set(out)
    return ctx.transpose(0, 2, 1, 3), None


if __name__ == "__main__":
    key = jax.random.PRNGKey(0)
    kq, kk, kv, ks = jax.random.split(key, 4)
    B, L, H, D = 2, 64, 4, 32   # factor=5 -> n_top = sample_k = 25 < 64 (sparse path)

    queries = jax.random.normal(kq, (B, L, H, D), jnp.float32)
    keys = jax.random.normal(kk, (B, L, H, D), jnp.float32)
    values = jax.random.normal(kv, (B, L, H, D), jnp.float32)

    ctx, attn = prob_attention(queries, keys, values, None, sample_key=ks)
    ctx = jax.block_until_ready(ctx)

    assert ctx.shape == (B, L, H, D)
    assert bool(jnp.all(jnp.isfinite(ctx)))

    ctx_ref, _ = prob_attention_ref(queries, keys, values, sample_key=ks)
    np.testing.assert_allclose(np.asarray(ctx), np.asarray(ctx_ref),
                               rtol=5e-2, atol=5e-2)
    print("KERNEL_OK")
</pallas_src>

<mosaic_0001>
module attributes {stable_mosaic.version = 11 : i64} {
  func.func @_probe_kernel(%arg0: i32, %arg1: i32, %arg2: memref<1x64x128xbf16, #tpu.memory_space<vmem>>, %arg3: memref<1x64x128xbf16, #tpu.memory_space<vmem>>, %arg4: memref<64x64xbf16, #tpu.memory_space<vmem>>, %arg5: memref<1x1x256xf32, #tpu.memory_space<vmem>>, %arg6: memref<1x256xf32, #tpu.memory_space<vmem>>, %arg7: memref<1x256xf32, #tpu.memory_space<vmem>>) attributes {dimension_semantics = [#tpu.dimension_semantics<parallel>, #tpu.dimension_semantics<arbitrary>], iteration_bounds = array<i64: 2, 1>, scalar_prefetch = 0 : i64, scratch_operands = 2 : i64, tpu.core_type = #tpu.core_type<tc>, window_params = [{transform_indices = @transform_0, window_bounds = array<i64: 1, 64, 128>}, {transform_indices = @transform_1, window_bounds = array<i64: 1, 64, 128>}, {transform_indices = @transform_2, window_bounds = array<i64: 64, 64>}, {transform_indices = @transform_3, window_bounds = array<i64: 1, 1, 256>}]} {
    %c0_i32 = arith.constant 0 : i32
    %0 = arith.cmpi eq, %arg1, %c0_i32 : i32
    %1 = arith.extui %0 : i1 to i32
    %c0_i32_0 = arith.constant 0 : i32
    %2 = arith.cmpi ne, %1, %c0_i32_0 : i32
    scf.if %2 {
      %cst_34 = arith.constant -1.000000e+30 : f32
      %62 = vector.broadcast %cst_34 : f32 to vector<1x256xf32>
      %c0_35 = arith.constant 0 : index
      %c0_36 = arith.constant 0 : index
      %63 = vector.load %arg6[%c0_35, %c0_36] : memref<1x256xf32, #tpu.memory_space<vmem>>, vector<1x256xf32>
      tpu.vector_store %arg6[%c0_35, %c0_36], %62 {strides = array<i32>} : memref<1x256xf32, #tpu.memory_space<vmem>>, vector<1x256xf32>,
      %cst_37 = arith.constant 0.000000e+00 : f32
      %64 = vector.broadcast %cst_37 : f32 to vector<1x256xf32>
      %c0_38 = arith.constant 0 : index
      %c0_39 = arith.constant 0 : index
      %65 = vector.load %arg7[%c0_38, %c0_39] : memref<1x256xf32, #tpu.memory_space<vmem>>, vector<1x256xf32>
      tpu.vector_store %arg7[%c0_38, %c0_39], %64 {strides = array<i32>} : memref<1x256xf32, #tpu.memory_space<vmem>>, vector<1x256xf32>,
    } else {
    }
    %c0 = arith.constant 0 : index
    %c0_1 = arith.constant 0 : index
    %c0_2 = arith.constant 0 : index
    %3 = vector.load %arg2[%c0, %c0_1, %c0_2] : memref<1x64x128xbf16, #tpu.memory_space<vmem>>, vector<1x64x128xbf16>
    %4 = vector.shape_cast %3 : vector<1x64x128xbf16> to vector<64x128xbf16>
    %c0_3 = arith.constant 0 : index
    %c0_4 = arith.constant 0 : index
    %c0_5 = arith.constant 0 : index
    %5 = vector.load %arg3[%c0_3, %c0_4, %c0_5] : memref<1x64x128xbf16, #tpu.memory_space<vmem>>, vector<1x64x128xbf16>
    %6 = vector.shape_cast %5 : vector<1x64x128xbf16> to vector<64x128xbf16>
    %c0_6 = arith.constant 0 : index
    %c0_7 = arith.constant 0 : index
    %7 = vector.load %arg4[%c0_6, %c0_7] : memref<64x64xbf16, #tpu.memory_space<vmem>>, vector<64x64xbf16>
    %8 = arith.extf %7 : vector<64x64xbf16> to vector<64x64xf32>
    %cst = arith.constant 0.000000e+00 : f32
    %9 = vector.broadcast %cst : f32 to vector<64x64xf32>
    %10 = arith.cmpf ogt, %8, %9 : vector<64x64xf32>
    %11 = vector.extract_strided_slice %4 {offsets = [0, 0], sizes = [64, 32], strides = [1, 1]} : vector<64x128xbf16> to vector<64x32xbf16>
    %12 = vector.extract_strided_slice %6 {offsets = [0, 0], sizes = [64, 32], strides = [1, 1]} : vector<64x128xbf16> to vector<64x32xbf16>
    %cst_8 = arith.constant dense<0.000000e+00> : vector<64x64xf32>
    %13 = tpu.matmul %12, %11, %cst_8 {dimension_numbers = #tpu.dot_dimension_numbers<[1], [1], [0], [0], [0, 0, 1, 0], [], []>} : vector<64x32xbf16>, vector<64x32xbf16>, vector<64x64xf32> -> vector<64x64xf32>
    %cst_9 = arith.constant -1.000000e+30 : f32
    %14 = vector.broadcast %cst_9 : f32 to vector<64x64xf32>
    %15 = arith.select %10, %13, %14 : vector<64x64xi1>, vector<64x64xf32>
    %cst_10 = arith.constant dense<0xFF800000> : vector<64xf32>
    %16 = vector.multi_reduction <maximumf>, %15, %cst_10 [0] : vector<64x64xf32> to vector<64xf32>
    %17 = vector.shape_cast %16 : vector<64xf32> to vector<1x64xf32>
    %18 = arith.mulf %13, %8 : vector<64x64xf32>
    %cst_11 = arith.constant dense<0.000000e+00> : vector<64xf32>
    %19 = vector.multi_reduction <add>, %18, %cst_11 [0] : vector<64x64xf32> to vector<64xf32>
    %20 = vector.shape_cast %19 : vector<64xf32> to vector<1x64xf32>
    %21 = vector.extract_strided_slice %4 {offsets = [0, 32], sizes = [64, 32], strides = [1, 1]} : vector<64x128xbf16> to vector<64x32xbf16>
    %22 = vector.extract_strided_slice %6 {offsets = [0, 32], sizes = [64, 32], strides = [1, 1]} : vector<64x128xbf16> to vector<64x32xbf16>
    %cst_12 = arith.constant dense<0.000000e+00> : vector<64x64xf32>
    %23 = tpu.matmul %22, %21, %cst_12 {dimension_numbers = #tpu.dot_dimension_numbers<[1], [1], [0], [0], [0, 0, 1, 0], [], []>} : vector<64x32xbf16>, vector<64x32xbf16>, vector<64x64xf32> -> vector<64x64xf32>
    %cst_13 = arith.constant -1.000000e+30 : f32
    %24 = vector.broadcast %cst_13 : f32 to vector<64x64xf32>
    %25 = arith.select %10, %23, %24 : vector<64x64xi1>, vector<64x64xf32>
    %cst_14 = arith.constant dense<0xFF800000> : vector<64xf32>
    %26 = vector.multi_reduction <maximumf>, %25, %cst_14 [0] : vector<64x64xf32> to vector<64xf32>
    %27 = vector.shape_cast %26 : vector<64xf32> to vector<1x64xf32>
    %28 = arith.mulf %23, %8 : vector<64x64xf32>
    %cst_15 = arith.constant dense<0.000000e+00> : vector<64xf32>
    %29 = vector.multi_reduction <add>, %28, %cst_15 [0] : vector<64x64xf32> to vector<64xf32>
    %30 = vector.shape_cast %29 : vector<64xf32> to vector<1x64xf32>
    %31 = vector.extract_strided_slice %4 {offsets = [0, 64], sizes = [64, 32], strides = [1, 1]} : vector<64x128xbf16> to vector<64x32xbf16>
    %32 = vector.extract_strided_slice %6 {offsets = [0, 64], sizes = [64, 32], strides = [1, 1]} : vector<64x128xbf16> to vector<64x32xbf16>
    %cst_16 = arith.constant dense<0.000000e+00> : vector<64x64xf32>
    %33 = tpu.matmul %32, %31, %cst_16 {dimension_numbers = #tpu.dot_dimension_numbers<[1], [1], [0], [0], [0, 0, 1, 0], [], []>} : vector<64x32xbf16>, vector<64x32xbf16>, vector<64x64xf32> -> vector<64x64xf32>
    %cst_17 = arith.constant -1.000000e+30 : f32
    %34 = vector.broadcast %cst_17 : f32 to vector<64x64xf32>
    %35 = arith.select %10, %33, %34 : vector<64x64xi1>, vector<64x64xf32>
    %cst_18 = arith.constant dense<0xFF800000> : vector<64xf32>
    %36 = vector.multi_reduction <maximumf>, %35, %cst_18 [0] : vector<64x64xf32> to vector<64xf32>
    %37 = vector.shape_cast %36 : vector<64xf32> to vector<1x64xf32>
    %38 = arith.mulf %33, %8 : vector<64x64xf32>
    %cst_19 = arith.constant dense<0.000000e+00> : vector<64xf32>
    %39 = vector.multi_reduction <add>, %38, %cst_19 [0] : vector<64x64xf32> to vector<64xf32>
    %40 = vector.shape_cast %39 : vector<64xf32> to vector<1x64xf32>
    %41 = vector.extract_strided_slice %4 {offsets = [0, 96], sizes = [64, 32], strides = [1, 1]} : vector<64x128xbf16> to vector<64x32xbf16>
    %42 = vector.extract_strided_slice %6 {offsets = [0, 96], sizes = [64, 32], strides = [1, 1]} : vector<64x128xbf16> to vector<64x32xbf16>
    %cst_20 = arith.constant dense<0.000000e+00> : vector<64x64xf32>
    %43 = tpu.matmul %42, %41, %cst_20 {dimension_numbers = #tpu.dot_dimension_numbers<[1], [1], [0], [0], [0, 0, 1, 0], [], []>} : vector<64x32xbf16>, vector<64x32xbf16>, vector<64x64xf32> -> vector<64x64xf32>
    %cst_21 = arith.constant -1.000000e+30 : f32
    %44 = vector.broadcast %cst_21 : f32 to vector<64x64xf32>
    %45 = arith.select %10, %43, %44 : vector<64x64xi1>, vector<64x64xf32>
    %cst_22 = arith.constant dense<0xFF800000> : vector<64xf32>
    %46 = vector.multi_reduction <maximumf>, %45, %cst_22 [0] : vector<64x64xf32> to vector<64xf32>
    %47 = vector.shape_cast %46 : vector<64xf32> to vector<1x64xf32>
    %48 = arith.mulf %43, %8 : vector<64x64xf32>
    %cst_23 = arith.constant dense<0.000000e+00> : vector<64xf32>
    %49 = vector.multi_reduction <add>, %48, %cst_23 [0] : vector<64x64xf32> to vector<64xf32>
    %50 = vector.shape_cast %49 : vector<64xf32> to vector<1x64xf32>
    %c0_24 = arith.constant 0 : index
    %c0_25 = arith.constant 0 : index
    %51 = vector.load %arg6[%c0_24, %c0_25] : memref<1x256xf32, #tpu.memory_space<vmem>>, vector<1x256xf32>
    %52 = tpu.concatenate %17, %27, %37, %47 in 1 : vector<1x64xf32>, vector<1x64xf32>, vector<1x64xf32>, vector<1x64xf32> -> vector<1x256xf32>
    %53 = arith.maximumf %51, %52 : vector<1x256xf32>
    %c0_26 = arith.constant 0 : index
    %c0_27 = arith.constant 0 : index
    %54 = vector.load %arg6[%c0_26, %c0_27] : memref<1x256xf32, #tpu.memory_space<vmem>>, vector<1x256xf32>
    tpu.vector_store %arg6[%c0_26, %c0_27], %53 {strides = array<i32>} : memref<1x256xf32, #tpu.memory_space<vmem>>, vector<1x256xf32>,
    %c0_28 = arith.constant 0 : index
    %c0_29 = arith.constant 0 : index
    %55 = vector.load %arg7[%c0_28, %c0_29] : memref<1x256xf32, #tpu.memory_space<vmem>>, vector<1x256xf32>
    %56 = tpu.concatenate %20, %30, %40, %50 in 1 : vector<1x64xf32>, vector<1x64xf32>, vector<1x64xf32>, vector<1x64xf32> -> vector<1x256xf32>
    %57 = arith.addf %55, %56 : vector<1x256xf32>
    %c0_30 = arith.constant 0 : index
    %c0_31 = arith.constant 0 : index
    %58 = vector.load %arg7[%c0_30, %c0_31] : memref<1x256xf32, #tpu.memory_space<vmem>>, vector<1x256xf32>
    tpu.vector_store %arg7[%c0_30, %c0_31], %57 {strides = array<i32>} : memref<1x256xf32, #tpu.memory_space<vmem>>, vector<1x256xf32>,
    %c0_i32_32 = arith.constant 0 : i32
    %59 = arith.cmpi eq, %arg1, %c0_i32_32 : i32
    %60 = arith.extui %59 : i1 to i32
    %c0_i32_33 = arith.constant 0 : i32
    %61 = arith.cmpi ne, %60, %c0_i32_33 : i32
    scf.if %61 {
      %c0_34 = arith.constant 0 : index
      %c0_35 = arith.constant 0 : index
      %62 = vector.load %arg6[%c0_34, %c0_35] : memref<1x256xf32, #tpu.memory_space<vmem>>, vector<1x256xf32>
      %c0_36 = arith.constant 0 : index
      %c0_37 = arith.constant 0 : index
      %63 = vector.load %arg7[%c0_36, %c0_37] : memref<1x256xf32, #tpu.memory_space<vmem>>, vector<1x256xf32>
      %cst_38 = arith.constant 6.400000e+01 : f32
      %64 = vector.broadcast %cst_38 : f32 to vector<1x256xf32>
      %65 = arith.divf %63, %64 : vector<1x256xf32>
      %66 = arith.subf %62, %65 : vector<1x256xf32>
      %c0_39 = arith.constant 0 : index
      %c0_40 = arith.constant 0 : index
      %c0_41 = arith.constant 0 : index
      %67 = vector.load %arg5[%c0_39, %c0_40, %c0_41] : memref<1x1x256xf32, #tpu.memory_space<vmem>>, vector<1x1x256xf32>
      %68 = vector.shape_cast %67 : vector<1x1x256xf32> to vector<1x256xf32>
      %69 = vector.shape_cast %66 : vector<1x256xf32> to vector<1x1x256xf32>
      tpu.vector_store %arg5[%c0_39, %c0_40, %c0_41], %69 {strides = array<i32>} : memref<1x1x256xf32, #tpu.memory_space<vmem>>, vector<1x1x256xf32>,
    } else {
    }
    return
  }
  func.func @transform_0(%arg0: i32, %arg1: i32) -> (i32, i32, i32) {
    %c0_i32 = arith.constant 0 : i32
    %c0_i32_0 = arith.constant 0 : i32
    %c0_i32_1 = arith.constant 0 : i32
    return %arg0, %c0_i32, %c0_i32_0 : i32, i32, i32
  }
  func.func @transform_1(%arg0: i32, %arg1: i32) -> (i32, i32, i32) {
    %c0_i32 = arith.constant 0 : i32
    %c0_i32_0 = arith.constant 0 : i32
    return %arg0, %arg1, %c0_i32 : i32, i32, i32
  }
  func.func @transform_2(%arg0: i32, %arg1: i32) -> (i32, i32) {
    %c0_i32 = arith.constant 0 : i32
    %c0_i32_0 = arith.constant 0 : i32
    return %arg1, %c0_i32 : i32, i32
  }
  func.func @transform_3(%arg0: i32, %arg1: i32) -> (i32, i32, i32) {
    %c0_i32 = arith.constant 0 : i32
    %c0_i32_0 = arith.constant 0 : i32
    %c0_i32_1 = arith.constant 0 : i32
    return %arg0, %c0_i32, %c0_i32_0 : i32, i32, i32
  }
}

</mosaic_0001>

<bundles_post_ra>
// kernel: tpu_custom_call.1
= control target key start
LH: loop header
LB: loop body
LE: loop exit
PB: predicated region body
PF: predicated region fallthrough
CT: control target
= control target key end

     0   :  { %s2240_s0 = inlined_call_operand.hbm [shape: bf16[2,64,128], index: 0, kind: input, shape index: {}]   ;;  %s2241_s1 = inlined_call_operand.hbm [shape: bf16[2,64,128], index: 1, kind: input, shape index: {}]   ;;  %s2242_s2 = inlined_call_operand.hbm [shape: bf16[64,64], index: 2, kind: input, shape index: {}]   ;;  %s2243_s3 = inlined_call_operand.hbm [shape: f32[2,1,256], index: 3, kind: output, shape index: {}]  }
   0x1   :  { %2251 = sst [smem:[#allocation15_spill]] %s2240_s0 }
   0x2   :  { %2252 = sst [smem:[#allocation16_spill]] %s2242_s2 }
   0x3   :  { %8 = vsyncpa [#allocation5], 0 }
   0x4   :  { %10 = vsyncpa [#allocation5 + $0x1], 0 }
   0x5   :  { %11 = vsyncpa [#allocation8], 0 }
   0x6   :  { %13 = vsyncpa [#allocation8 + $0x1], 0 }
   0x7   :  { %14 = vsyncpa [#allocation6], 0 }
   0x8   :  { %16 = vsyncpa [#allocation6 + $0x1], 0  ;;  %s1688_s12 = smov 0   ;;  %s1690_s13 = smov 0  }
   0x9   :  { %s1692_s14 = smov 0   ;;  %s1694_s15 = smov 0  }
   0xa   :  { %s1696_s16 = smov 0   ;;  %s1698_s17 = smov 0  }
   0xb LB: > { %s1719_s18 = sadd.s32 4294967295, %s1654_s17   ;;  %s1204_s19 = sadd.s32 4294967294, %s1654_s17   ;;  %s1654_s17 = sphi %s1698_s17, %s22_s17   ;;  %s1650_s16 = sphi %s1696_s16, %s2277_s16   ;;  %s1646_s15 = sphi %s1694_s15, %s2276_s15   ;;  %s1642_s14 = sphi %s1692_s14, %s2275_s14   ;;  %s1638_s13 = sphi %s1690_s13, %s2274_s13   ;;  %s1634_s12 = sphi %s1688_s12, %s2273_s12  }
   0xc   : > { %p54_p0 = scmp.ne.s32.totalorder %s1638_s13, %s1634_s12  ;;  %p2244_p1 = scmp.eq.s32.totalorder %s1719_s18, 0 }
   0xd   : > { %p138_p3 = scmp.eq.s32.totalorder %s1204_s19, 1  ;;  %p1205_p5 = scmp.ge.s32.totalorder %s1654_s17, 1 }
   0xe   : > { %p1728_p4 = por %p2244_p1, %p54_p0  ;;  %p145_p7 = scmp.lt.s32.totalorder %s1654_s17, 3 }
   0xf   : > { %p1733_p6 = por %p138_p3, %p54_p0  ;;  %s1656_s23 = smov [#allocation9]  }
  0x10   : > { %s2253_s20 = scalar_select %p1728_p4, 1, 0 }
  0x11   : > { %s2254_s21 = scalar_select %p1733_p6, 1, 0 }
  0x12   : > { %p1738_p8 = pnand %p1205_p5, %p145_p7  ;;  %s160_s24 = sshll.u32 %s1656_s23, 4  ;;  %s161_s24 = int_to_ptr.vmem [resolvable:$true] %s160_s24 }
  0x13   : > { %s34_s26 = sadd.s32 1, %s1650_s16  ;;  %s2257_s2 = sld [smem:[#allocation16_spill]] }
  0x14   : > { %s2255_s22 = scalar_select %p1738_p8, 1, 0 }
  0x15   : > { %p1392_p9 = pneg %p1738_p8 }
  0x17   : > { %p1747_p11 = pnand %p1392_p9, %p2244_p1 }
  0x19   : > { %s1476_s29 = scalar_lea.hbm %s2257_s2, 512  ;;  %p1478_p13 = pneg %p1747_p11 }
  0x1a   : > { %p1477_p12 = scmp.ne.s32.totalorder %s2257_s2, %s1476_s29  ;;  %p1483_p5 = scmp.lt.u32.totalorder %s1476_s29, %s2257_s2 }
  0x1c   : > { %p1479_p0 = pnand %p1478_p13, %p1477_p12 }
  0x1e   : > { %p1480_p3 = pneg %p1479_p0 }
  0x20   : > { %p1485_p7 = pnand %p1483_p5, %p1480_p3 }
  0x22   : > { %1488 = shalt.err (!%p1485_p7)
}
  0x23   : > { %s1489_s7 = scalar_lea.vmem %s161_s24, 512  ;;  %p1497_p2 = scmp.lt.s32.totalorder %s161_s24, %s161_s24 }
  0x24   : > { %p1490_p9 = scmp.ne.s32.totalorder %s161_s24, %s1489_s7  ;;  %p1498_p6 = scmp.lt.s32.totalorder %s1489_s7, %s1489_s7 }
  0x26   : > { %p1492_p10 = pnand %p1490_p9, %p1478_p13  ;;  %p1499_p4 = por %p1498_p6, %p1497_p2 }
  0x28   : > { %p1493_p1 = pneg %p1492_p10 }
  0x2a   : > { %p1500_p8 = pnand %p1499_p4, %p1493_p1 }
  0x2c   : > { %1503 = shalt.err (!%p1500_p8)
}
  0x2d   : > { %s2247_s8 = smov 64   ;;  %s2249_s9 = smov 4  }
  0x2e   : > { %1395 = dma.hbm_to_vmem [thread:$0]  (!%p1747_p11), %s2257_s2, 512, %s161_s24, [#allocation8], %s2247_s8, %s2247_s8, %s2249_s9  }
  0x2f   : > { %p36_p1 = scmp.ge.s32.totalorder %s34_s26, 2  ;;  %s41_s19 = sadd.s32 1, %s1642_s14 }
  0x30   : > { %p48_p2 = scmp.ne.s32.totalorder %s1642_s14, %s1638_s13  ;;  %p49_p4 = scmp.eq.s32.totalorder %s1654_s17, 0 }
  0x31   : > { %s2279_s26 = smov (%p36_p1, %s34_s26), 0  ;;  %p2259_p8 = scmp.eq.s32.totalorder %s1719_s18, 1 }
  0x32   : > { %p1777_p6 = por %p49_p4, %p48_p2  ;;  %s38_s27 = ssub.s32 %s1650_s16, %s2279_s26 }
  0x33   : > { %p1783_p10 = por %p2259_p8, %p48_p2  ;;  %p1408_p12 = scmp.lt.s32.totalorder %s1654_s17, 2 }
  0x34   : > { %p39_p11 = scmp.eq.s32.totalorder %s38_s27, 0  ;;  %s174_s24 = sand.u32 1, %s1642_s14  }
  0x35   : > { %s1208_s28 = sshll.u32 %s174_s24, 5  ;;  %s1248_s30 = sshll.u32 %s1650_s16, 9 }
  0x36   : > { %s1792_s29 = scalar_select %p39_p11, %s1642_s14, %s41_s19  }
  0x37   : > { %s2261_s0 = sld [smem:[#allocation15_spill]]  ;;  %s178_s7 = scalar_lea.vmem [#allocation4], %s1208_s28 }
  0x38   : > { %s185_s10 = sshll.u32 %s178_s7, 4  ;;  %p1804_p13 = pnand %p1408_p12, %p1777_p6  ;;  %s1800_s10 = int_to_ptr.vmem [resolvable:$true] %s185_s10 }
  0x39   : > { %s1811_s4 = scalar_lea.hbm %s2241_s1, %s1248_s30  ;;  %s199_s5 = scalar_lea.vmem [#allocation7], %s1208_s28 }
  0x3a   : > { %s1813_s8 = sshll.u32 %s199_s5, 4  ;;  %s1815_s9 = scalar_lea.sflag [#allocation5], %s174_s24  ;;  %s1847_s8 = int_to_ptr.vmem [resolvable:$true] %s1813_s8 }
  0x3b   : > { %p1506_p3 = pneg %p1804_p13 }
  0x3d   : > { %s1798_s6 = scalar_lea.hbm %s2261_s0, %s1248_s30  ;;  %s1509_s19 = scalar_lea.hbm %s2261_s0, 1024 }
  0x3e   : > { %s1504_s7 = scalar_lea.hbm %s1798_s6, 512  ;;  %p1510_p9 = scmp.lt.u32.totalorder %s1798_s6, %s2261_s0 }
  0x3f   : > { %p1505_p0 = scmp.ne.s32.totalorder %s1798_s6, %s1504_s7  ;;  %p1511_p1 = scmp.lt.u32.totalorder %s1509_s19, %s1504_s7 }
  0x40   : > { %p1513_p4 = scmp.lt.u32.totalorder %s1504_s7, %s1798_s6 }
  0x41   : > { %p1507_p5 = pnand %p1506_p3, %p1505_p0  ;;  %p1512_p2 = por %p1511_p1, %p1510_p9 }
  0x43   : > { %p1508_p7 = pneg %p1507_p5  ;;  %p1514_p6 = por %p1513_p4, %p1512_p2 }
  0x45   : > { %p1515_p8 = pnand %p1514_p6, %p1508_p7 }
  0x47   : > { %1518 = shalt.err (!%p1515_p8)
}
  0x48   : > { %s1519_s24 = scalar_lea.vmem %s1800_s10, 512  ;;  %s1659_s2 = smov [#allocation4]  }
  0x49   : > { %p1520_p12 = scmp.ne.s32.totalorder %s1800_s10, %s1519_s24  ;;  %s1524_s28 = sshll.u32 %s1659_s2, 4  ;;  %s1525_s28 = int_to_ptr.vmem [resolvable:$false] %s1524_s28 }
  0x4a   : > { %s1526_s5 = scalar_lea.vmem %s1525_s28, 1024  ;;  %p1527_p5 = scmp.lt.s32.totalorder %s1800_s10, %s1525_s28 }
  0x4b   : > { %p1522_p11 = pnand %p1520_p12, %p1506_p3  ;;  %p1528_p9 = scmp.lt.s32.totalorder %s1526_s5, %s1519_s24 }
  0x4d   : > { %p1523_p0 = pneg %p1522_p11  ;;  %p1529_p1 = por %p1528_p9, %p1527_p5 }
  0x4f   : > { %p1530_p2 = pnand %p1529_p1, %p1523_p0 }
  0x51   : > { %1533 = shalt.err (!%p1530_p2)
}
  0x52   : > { %s2263_s7 = smov 4   ;;  %s2264_s23 = smov 64  }
  0x53   : > { %1399 = dma.hbm_to_vmem [thread:$0]  (!%p1804_p13), %s1798_s6, 512, %s1800_s10, %s1815_s9, %s2264_s23, %s2264_s23, %s2263_s7  }
  0x54   : > { %s195_s19 = sand.u32 1, %s1654_s17   ;;  %s1534_s30 = scalar_lea.hbm %s1811_s4, 512 }
  0x55   : > { %s1850_s27 = scalar_lea.sflag [#allocation8], %s195_s19  ;;  %p1535_p7 = scmp.ne.s32.totalorder %s1811_s4, %s1534_s30 }
  0x56   : > { %s1539_s28 = scalar_lea.hbm %s2241_s1, 1024  ;;  %p1540_p8 = scmp.lt.u32.totalorder %s1811_s4, %s2241_s1 }
  0x57   : > { %p1537_p4 = pnand %p1535_p7, %p1506_p3  ;;  %p1541_p12 = scmp.lt.u32.totalorder %s1539_s28, %s1534_s30 }
  0x58   : > { %p1543_p0 = scmp.lt.u32.totalorder %s1534_s30, %s1811_s4 }
  0x59   : > { %p1538_p6 = pneg %p1537_p4  ;;  %p1542_p11 = por %p1541_p12, %p1540_p8 }
  0x5b   : > { %p1544_p5 = por %p1543_p0, %p1542_p11 }
  0x5d   : > { %p1545_p9 = pnand %p1544_p5, %p1538_p6 }
  0x5f   : > { %1548 = shalt.err (!%p1545_p9)
}
  0x60   : > { %s1549_s9 = scalar_lea.vmem %s1847_s8, 512  ;;  %s1660_s6 = smov [#allocation7]  }
  0x61   : > { %p1550_p1 = scmp.ne.s32.totalorder %s1847_s8, %s1549_s9  ;;  %s1554_s10 = sshll.u32 %s1660_s6, 4  ;;  %s1555_s10 = int_to_ptr.vmem [resolvable:$false] %s1554_s10 }
  0x62   : > { %s1556_s0 = scalar_lea.vmem %s1555_s10, 1024  ;;  %p1557_p4 = scmp.lt.s32.totalorder %s1847_s8, %s1555_s10 }
  0x63   : > { %p1552_p2 = pnand %p1550_p1, %p1506_p3  ;;  %p1558_p8 = scmp.lt.s32.totalorder %s1556_s0, %s1549_s9 }
  0x65   : > { %p1553_p7 = pneg %p1552_p2  ;;  %p1559_p12 = por %p1558_p8, %p1557_p4 }
  0x67   : > { %p1560_p11 = pnand %p1559_p12, %p1553_p7 }
  0x69   : > { %1563 = shalt.err (!%p1560_p11)
}
  0x6a   : > { %1402 = dma.hbm_to_vmem [thread:$0]  (!%p1804_p13), %s1811_s4, 512, %s1847_s8, %s1850_s27, %s2264_s23, %s2264_s23, %s2263_s7  }
  0x6b   : > { %p2265_p3 = scmp.ne.s32.totalorder %s2255_s22, 0 }
  0x6c   : > { %s1882_s19 = sand.u32 (!%p2265_p3), 1, %s1638_s13   ;;  %p2266_p6 = scmp.ne.s32.totalorder (!%p2265_p3), %s2253_s20, 0 }
  0x6d   : > { %220 = sbr.rel (%p2265_p3) target bundleno = 700 (0x2bc), region = 32  ;;  %s1215_s30 = sshll.u32 (!%p2265_p3), %s1882_s19, 5 }
  0x6e   : > { %s223_s24 = scalar_lea.sflag (!%p2265_p3), [#allocation5], %s1882_s19  ;;  %s226_s2 = scalar_lea.vmem (!%p2265_p3), [#allocation4], %s1215_s30 }
  0x74   : > { %1617 = dma.done.wait (%p2266_p6), %s223_s24, 512  }
  0x75   : > { %1619 = vsyncadd (%p2266_p6), %s223_s24, 4294966784  ;;  %s231_s8 = sand.u32 1, %s1719_s18   ;;  %s235_s22 = scalar_lea.vmem [#allocation7], %s1215_s30 }
  0x76   : > { %s232_s11 = scalar_lea.sflag [#allocation8], %s231_s8 }
  0x77   : > { %1621 = dma.done.wait (%p2266_p6), %s232_s11, 512  }
  0x78   : > { %1623 = vsyncadd (%p2266_p6), %s232_s11, 4294966784  ;;  %p2267_p13 = scmp.eq.s32.totalorder %s1719_s18, 0 }
  0x7a   : > { %1625 = dma.done.wait (%p2267_p13), [#allocation8], 512   ;;  %p2268_p0 = pmov %p2267_p13 }
  0x7b   : > { %v1468_v0 = vld [vmem:[%s226_s2] sm:$0xff]   ;;  %v1469_v1 = vld [vmem:[%s226_s2 + $0x8] sm:$0xff]   ;;  %vm360_vm0 = vcmask 261120   ;;  %s1661_s4 = smov 96   ;;  %v1470_v2 = vld [vmem:[%s226_s2 + $0x10] sm:$0xff]   ;;  %s1662_s20 = smov 32  }
  0x7c   : > { %1627 = vsyncadd (%p2268_p0), [#allocation8], 4294966784  ;;  %517 = vrot.lane.b32.xlu0 %v1468_v0, %s1661_s4  ;;  %1366 = vmatprep.subr.msk.bf16.mxu0 %vm360_vm0, %v1468_v0  ;;  %v1471_v3 = vld [vmem:[%s226_s2 + $0x18] sm:$0xff]   ;;  %v1472_v4 = vld [vmem:[%s235_s22] sm:$0xff]   ;;  %s1663_s18 = smov 64   ;;  %v374_v8 = vsel %vm360_vm0, %v1468_v0, 0 }
  0x7d   : > { %521 = vrot.lane.b32.xlu1 %v1470_v2, %s1661_s4  ;;  %1310 = vmatprep.mubr.msk.bf16.mxu0 %vm360_vm0, %v1472_v4  ;;  %v1473_v5 = vld [vmem:[%s235_s22 + $0x8] sm:$0xff]   ;;  %v1474_v6 = vld [vmem:[%s235_s22 + $0x10] sm:$0xff]   ;;  %v1475_v7 = vld [vmem:[%s235_s22 + $0x18] sm:$0xff]   ;;  %v377_v9 = vsel %vm360_vm0, %v1469_v1, 0  ;;  %v380_v10 = vsel %vm360_vm0, %v1470_v2, 0  ;;  %v383_v11 = vsel %vm360_vm0, %v1471_v3, 0 }
  0x7e   : > { %1303 = vmatpush3.bf16.xpose.msra.mxu0 %v374_v8  ;;  %v1267_v48 = vld [vmem:[#allocation9 + $0x8] sm:$0xff]   ;;  %v1252_v49 = vld [vmem:[#allocation9] sm:$0xff]   ;;  %v1269_v52 = vld [vmem:[#allocation9 + $0x18] sm:$0xff]   ;;  %vm458_vm1 = vcmask 523264   ;;  %s1218_s7 = sshll.u32 %s1882_s19, 1  ;;  %s1250_s23 = sshll.u32 %s1646_s15, 5 }
  0x7f   : > { %1367 = vmatprep.subr.msk.bf16.mxu0 %vm360_vm0, %v1469_v1  ;;  %v1955_v50 = vunpack.c.l.bf16 %v1267_v48  ;;  %v1957_v51 = vunpack.c.l.bf16 %v1252_v49  ;;  %v1268_v53 = vld [vmem:[#allocation9 + $0x10] sm:$0xff]   ;;  %v1959_v55 = vunpack.c.h.bf16 %v1267_v48  ;;  %v1961_v56 = vunpack.c.h.bf16 %v1252_v49  ;;  %s266_s27 = scalar_lea.vmem [#allocation10], %s1218_s7  ;;  %s2189_s6 = scalar_lea.hbm %s2243_s3, %s1250_s23 }
  0x80   : > { %519 = vrot.lane.b32.xlu0 %v1469_v1, %s1661_s4  ;;  %v1966_v61 = vunpack.c.l.bf16 %v1269_v52  ;;  %v1968_v62 = vunpack.c.l.bf16 %v1268_v53  ;;  %v1970_v63 = vunpack.c.h.bf16 %v1269_v52  ;;  %s1088_s28 = sshll.u32 %s266_s27, 4  ;;  %s1074_s10 = scalar_lea.sflag [#allocation6], %s1882_s19  ;;  %s2191_s28 = int_to_ptr.vmem [resolvable:$true] %s1088_s28 }
  0x81   : > { %523 = vrot.lane.b32.xlu1 %v1471_v3, %s1661_s4  ;;  %vm314_vm2 = vcmp.gt.f32.partialorder %v1955_v50, 0.0  ;;  %vm312_vm3 = vcmp.gt.f32.partialorder %v1957_v51, 0.0  ;;  %vm315_vm4 = vcmp.gt.f32.partialorder %v1959_v55, 0.0  ;;  %vm313_vm5 = vcmp.gt.f32.partialorder %v1961_v56, 0.0  ;;  %s1564_s15 = scalar_lea.vmem %s2191_s28, 32  ;;  %s1667_s0 = smov [#allocation10]  }
  0x82   : > { %vm318_vm6 = vcmp.gt.f32.partialorder %v1966_v61, 0.0  ;;  %vm316_vm7 = vcmp.gt.f32.partialorder %v1968_v62, 0.0  ;;  %vm319_vm8 = vcmp.gt.f32.partialorder %v1970_v63, 0.0  ;;  %p1565_p5 = scmp.ne.s32.totalorder %s2191_s28, %s1564_s15  ;;  %s1568_s30 = sshll.u32 %s1667_s0, 4  ;;  %s1569_s30 = int_to_ptr.vmem [resolvable:$false] %s1568_s30 }
  0x83   : > { %s1570_s24 = scalar_lea.vmem %s1569_s30, 64  ;;  %p1571_p2 = scmp.lt.s32.totalorder %s2191_s28, %s1569_s30 }
  0x84   : > { %509 = vrot.lane.b32.xlu0 %v1472_v4, %s1661_s4  ;;  %p1566_p9 = pnand %p1565_p5, %p1783_p10  ;;  %p1572_p7 = scmp.lt.s32.totalorder %s1570_s24, %s1564_s15 }
  0x85   : > { %843 = vrot.lane.b32.xlu1 %v1468_v0, %s1662_s20 }
  0x86   : > { %1305 = vmatpush3.bf16.xpose.msra.mxu0 %v377_v9  ;;  %p1567_p1 = pneg %p1566_p9  ;;  %p1573_p4 = por %p1572_p7, %p1571_p2 }
  0x87   : > { %1368 = vmatprep.subr.msk.bf16.mxu0 %vm360_vm0, %v1470_v2 }
  0x88   : > { %511 = vrot.lane.b32.xlu0 %v1473_v5, %s1661_s4  ;;  %p1574_p8 = pnand %p1573_p4, %p1567_p1 }
  0x89   : > { %845 = vrot.lane.b32.xlu1 %v1469_v1, %s1662_s20 }
  0x8c   : > { %847 = vrot.lane.b32.xlu0 %v1470_v2, %s1662_s20 }
  0x8d   : > { %513 = vrot.lane.b32.xlu1 %v1474_v6, %s1661_s4 }
  0x8e   : > { %1307 = vmatpush3.bf16.xpose.msra.mxu0 %v380_v10 }
  0x8f   : > { %1369 = vmatprep.subr.msk.bf16.mxu0 %vm360_vm0, %v1471_v3 }
  0x90   : > { %515 = vrot.lane.b32.xlu0 %v1475_v7, %s1661_s4 }
  0x91   : > { %849 = vrot.lane.b32.xlu1 %v1471_v3, %s1662_s20 }
  0x94   : > { %835 = vrot.lane.b32.xlu0 %v1472_v4, %s1662_s20 }
  0x95   : > { %837 = vrot.lane.b32.xlu1 %v1473_v5, %s1662_s20 }
  0x96   : > { %1309 = vmatpush3.bf16.xpose.msra.mxu0 %v383_v11 }
  0x98   : > { %839 = vrot.lane.b32.xlu0 %v1474_v6, %s1662_s20 }
  0x99   : > { %841 = vrot.lane.b32.xlu1 %v1475_v7, %s1662_s20 }
  0x9c   : > { %680 = vrot.lane.b32.xlu0 %v1468_v0, %s1663_s18 }
  0x9d   : > { %682 = vrot.lane.b32.xlu1 %v1469_v1, %s1663_s18  ;;  %1311 = vmatmul.mubr.msk.bf16.vlgmr.msra.gmra.mrb[0].mxu0 %vm360_vm0, %v1473_v5  ;;  %v1972_v1 = vunpack.c.h.bf16 %v1268_v53 }
  0x9e   : > { %1314 = vmatprep.mubr.msk.bf16.mxu0 %vm360_vm0, %v1474_v6 }
  0x9f   : > { %vm317_vm9 = vcmp.gt.f32.partialorder %v1972_v1, 0.0 }
  0xa0   : > { %684 = vrot.lane.b32.xlu0 %v1470_v2, %s1663_s18 }
  0xa1   : > { %686 = vrot.lane.b32.xlu1 %v1471_v3, %s1663_s18 }
  0xa4   : > { %672 = vrot.lane.b32.xlu0 %v1472_v4, %s1663_s18 }
  0xa5   : > { %674 = vrot.lane.b32.xlu1 %v1473_v5, %s1663_s18  ;;  %1315 = vmatmul.mubr.msk.bf16.gmra.mrb[4].mxu0 %vm360_vm0, %v1475_v7 }
  0xa8   : > { %676 = vrot.lane.b32.xlu0 %v1474_v6, %s1663_s18 }
  0xa9   : > { %678 = vrot.lane.b32.xlu1 %v1475_v7, %s1663_s18 }
  0xee   : > { %v518_v12 = vpop.permute.xlu0 %517 }
  0xef   : > { %1370 = vmatprep.subr.msk.bf16.mxu1 %vm360_vm0, %v518_v12  ;;  %v538_v13 = vsel %vm360_vm0, %v518_v12, 0  ;;  %v522_v14 = vpop.permute.xlu1 %521 }
  0xf0   : > { %1319 = vmatpush3.bf16.xpose.msra.mxu1 %v538_v13  ;;  %v544_v22 = vsel %vm360_vm0, %v522_v14, 0 }
  0xf2   : > { %v520_v15 = vpop.permute.xlu0 %519 }
  0xf3   : > { %1371 = vmatprep.subr.msk.bf16.mxu1 %vm360_vm0, %v520_v15  ;;  %v524_v16 = vpop.permute.xlu1 %523  ;;  %v541_v17 = vsel %vm360_vm0, %v520_v15, 0 }
  0xf4   : > { %v547_v27 = vsel %vm360_vm0, %v524_v16, 0 }
  0xf6   : > { %v510_v18 = vpop.permute.xlu0 %509 }
  0xf7   : > { %1326 = vmatprep.mubr.msk.bf16.mxu1 %vm360_vm0, %v510_v18  ;;  %v844_v19 = vpop.permute.xlu1 %843 }
  0xf8   : > { %1321 = vmatpush3.bf16.xpose.msra.mxu1 %v541_v17  ;;  %v864_v32 = vsel %vm360_vm0, %v844_v19, 0 }
  0xf9   : > { %1372 = vmatprep.subr.msk.bf16.mxu1 %vm360_vm0, %v522_v14 }
  0xfa   : > { %v512_v20 = vpop.permute.xlu0 %511 }
  0xfb   : > { %v846_v21 = vpop.permute.xlu1 %845 }
  0xfc   : > { %v867_v37 = vsel %vm360_vm0, %v846_v21, 0 }
  0xfe   : > { %v848_v23 = vpop.permute.xlu0 %847 }
  0xff   : > { %v514_v24 = vpop.permute.xlu1 %513  ;;  %v870_v40 = vsel %vm360_vm0, %v848_v23, 0 }
 0x100   : > { %1323 = vmatpush3.bf16.xpose.msra.mxu1 %v544_v22 }
 0x101   : > { %1373 = vmatprep.subr.msk.bf16.mxu1 %vm360_vm0, %v524_v16 }
 0x102   : > { %v516_v25 = vpop.permute.xlu0 %515 }
 0x103   : > { %v850_v26 = vpop.permute.xlu1 %849 }
 0x104   : > { %v873_v43 = vsel %vm360_vm0, %v850_v26, 0 }
 0x106   : > { %v836_v28 = vpop.permute.xlu0 %835 }
 0x107   : > { %v838_v29 = vpop.permute.xlu1 %837 }
 0x108   : > { %1325 = vmatpush3.bf16.xpose.msra.mxu1 %v547_v27 }
 0x109   : > { %1378 = vmatprep.subr.msk.bf16.mxu1 %vm360_vm0, %v844_v19 }
 0x10a   : > { %v840_v30 = vpop.permute.xlu0 %839 }
 0x10b   : > { %v842_v31 = vpop.permute.xlu1 %841 }
 0x10e   : > { %v681_v33 = vpop.permute.xlu0 %680 }
 0x10f   : > { %1327 = vmatmul.mubr.msk.bf16.vlgmr.msra.gmra.mrb[0].mxu1 %vm360_vm0, %v512_v20  ;;  %v701_v34 = vsel %vm360_vm0, %v681_v33, 0  ;;  %1374 = vmatprep.subr.msk.bf16.mxu0 %vm360_vm0, %v681_v33  ;;  %v683_v35 = vpop.permute.xlu1 %682 }
 0x110   : > { %1351 = vmatpush3.bf16.xpose.msra.mxu1 %v864_v32  ;;  %1330 = vmatprep.mubr.msk.bf16.mxu1 %vm360_vm0, %v514_v24  ;;  %v704_v38 = vsel %vm360_vm0, %v683_v35, 0 }
 0x111   : > { %1379 = vmatprep.subr.msk.bf16.mxu1 %vm360_vm0, %v846_v21  ;;  %1335 = vmatpush3.bf16.xpose.msra.mxu0 %v701_v34 }
 0x112   : > { %1375 = vmatprep.subr.msk.bf16.mxu0 %vm360_vm0, %v683_v35  ;;  %v685_v36 = vpop.permute.xlu0 %684 }
 0x113   : > { %v707_v41 = vsel %vm360_vm0, %v685_v36, 0  ;;  %v687_v42 = vpop.permute.xlu1 %686 }
 0x114   : > { %v710_v44 = vsel %vm360_vm0, %v687_v42, 0 }
 0x116   : > { %v673_v39 = vpop.permute.xlu0 %672 }
 0x117   : > { %1331 = vmatmul.mubr.msk.bf16.gmra.mrb[4].mxu1 %vm360_vm0, %v516_v25  ;;  %1342 = vmatprep.mubr.msk.bf16.mxu0 %vm360_vm0, %v673_v39  ;;  %v675_v45 = vpop.permute.xlu1 %674 }
 0x118   : > { %1353 = vmatpush3.bf16.xpose.msra.mxu1 %v867_v37  ;;  %1358 = vmatprep.mubr.msk.bf16.mxu1 %vm360_vm0, %v836_v28 }
 0x119   : > { %1380 = vmatprep.subr.msk.bf16.mxu1 %vm360_vm0, %v848_v23  ;;  %1337 = vmatpush3.bf16.xpose.msra.mxu0 %v704_v38 }
 0x11a   : > { %1376 = vmatprep.subr.msk.bf16.mxu0 %vm360_vm0, %v685_v36  ;;  %v677_v46 = vpop.permute.xlu0 %676 }
 0x11b   : > { %v679_v47 = vpop.permute.xlu1 %678 }
 0x120   : > { %1355 = vmatpush3.bf16.xpose.msra.mxu1 %v870_v40 }
 0x121   : > { %1381 = vmatprep.subr.msk.bf16.mxu1 %vm360_vm0, %v850_v26  ;;  %1339 = vmatpush3.bf16.xpose.msra.mxu0 %v707_v41 }
 0x122   : > { %1377 = vmatprep.subr.msk.bf16.mxu0 %vm360_vm0, %v687_v42 }
 0x128   : > { %1357 = vmatpush3.bf16.xpose.msra.mxu1 %v873_v43 }
 0x129   : > { %1341 = vmatpush3.bf16.xpose.msra.mxu0 %v710_v44 }
 0x12f   : > { %1359 = vmatmul.mubr.msk.bf16.vlgmr.msra.gmra.mrb[8].mxu1 %vm360_vm0, %v838_v29 }
 0x130   : > { %1362 = vmatprep.mubr.msk.bf16.mxu1 %vm360_vm0, %v840_v30  ;;  %1343 = vmatmul.mubr.msk.bf16.vlgmr.msra.gmra.mrb[8].mxu0 %vm360_vm0, %v675_v45 }
 0x131   : > { %1346 = vmatprep.mubr.msk.bf16.mxu0 %vm360_vm0, %v677_v46 }
 0x137   : > { %1363 = vmatmul.mubr.msk.bf16.gmra.mrb[12].mxu1 %vm360_vm0, %v842_v31 }
 0x138   : > { %1347 = vmatmul.mubr.msk.bf16.gmra.mrb[12].mxu0 %vm360_vm0, %v679_v47 }
 0x170   : > { %v1312_v54 = vpop.f32.mrb[0].mxu0 }
 0x171   : > { %v419_v57 = vpop.f32.mrb[1].mxu0  ;;  %v482_v58 = vmul.f32 %v1312_v54, %v1955_v50  ;;  %v452_v5 = vsel %vm314_vm2, %v1312_v54, -1e+30 }
 0x172   : > { %v480_v59 = vmul.f32 %v1957_v51, %v419_v57  ;;  %v1313_v60 = vpop.f32.mrb[2].mxu0  ;;  %v450_v7 = vsel %vm312_vm3, %v419_v57, -1e+30  ;;  %v461_v12 = vsel %vm458_vm1, %v452_v5, -inf }
 0x173   : > { %v422_v0 = vpop.f32.mrb[3].mxu0  ;;  %v483_v3 = vmul.f32 %v1313_v60, %v1959_v55  ;;  %v491_v6 = vsel %vm458_vm1, %v482_v58, 0.0  ;;  %v453_v8 = vsel %vm315_vm4, %v1313_v60, -1e+30  ;;  %v459_v15 = vsel %vm458_vm1, %v450_v7, -inf }
 0x174   : > { %v488_v2 = vsel %vm458_vm1, %v480_v59, 0.0  ;;  %v481_v4 = vmul.f32 %v1961_v56, %v422_v0  ;;  %v451_v10 = vsel %vm313_vm5, %v422_v0, -1e+30  ;;  %v462_v16 = vsel %vm458_vm1, %v453_v8, -inf }
 0x175   : > { %v493_v13 = vsel %vm458_vm1, %v483_v3, 0.0  ;;  %v460_v20 = vsel %vm458_vm1, %v451_v10, -inf }
 0x176   : > { %v489_v9 = vsel %vm458_vm1, %v481_v4, 0.0 }
 0x177   : > { %v490_v11 = vadd.f32 %v489_v9, %v488_v2 }
 0x178   : > { %v1316_v14 = vpop.f32.mrb[4].mxu0 }
 0x179   : > { %v492_v17 = vadd.f32 %v491_v6, %v490_v11  ;;  %v456_v18 = vsel %vm318_vm6, %v1316_v14, -1e+30  ;;  %v435_v19 = vpop.f32.mrb[5].mxu0  ;;  %v486_v26 = vmul.f32 %v1316_v14, %v1966_v61 }
 0x17a   : > { %v467_v21 = vsel %vm458_vm1, %v456_v18, -inf  ;;  %v454_v22 = vsel %vm316_vm7, %v435_v19, -1e+30  ;;  %v484_v23 = vmul.f32 %v1968_v62, %v435_v19  ;;  %v1317_v24 = vpop.f32.mrb[6].mxu0 }
 0x17b   : > { %v468_v25 = vmax.f32 %v461_v12, %v467_v21  ;;  %v463_v27 = vsel %vm458_vm1, %v454_v22, -inf  ;;  %v494_v28 = vadd.f32 %v493_v13, %v492_v17  ;;  %v438_v29 = vpop.f32.mrb[7].mxu0  ;;  %v457_v32 = vsel %vm319_vm8, %v1317_v24, -1e+30 }
 0x17c   : > { %v464_v30 = vmax.f32 %v459_v15, %v463_v27  ;;  %v495_v31 = vsel %vm458_vm1, %v484_v23, 0.0  ;;  %v487_v33 = vmul.f32 %v1317_v24, %v1970_v63  ;;  %v469_v35 = vsel %vm458_vm1, %v457_v32, -inf }
 0x17d   : > { %v496_v34 = vadd.f32 %v495_v31, %v494_v28  ;;  %v455_v36 = vsel %vm317_vm9, %v438_v29, -1e+30  ;;  %v485_v37 = vmul.f32 %v1972_v1, %v438_v29  ;;  %v470_v38 = vmax.f32 %v462_v16, %v469_v35 }
 0x17e   : > { %v465_v39 = vsel %vm458_vm1, %v455_v36, -inf  ;;  %v499_v40 = vsel %vm458_vm1, %v486_v26, 0.0  ;;  %v501_v45 = vsel %vm458_vm1, %v487_v33, 0.0 }
 0x17f   : > { %v466_v41 = vmax.f32 %v460_v20, %v465_v39  ;;  %v497_v42 = vsel %vm458_vm1, %v485_v37, 0.0  ;;  %v472_v43 = vmax.f32 %v468_v25, %v470_v38 }
 0x180   : > { %v498_v44 = vadd.f32 %v497_v42, %v496_v34 }
 0x181   : > { %v471_v46 = vmax.f32 %v464_v30, %v466_v41 }
 0x182   : > { %v500_v47 = vadd.f32 %v499_v40, %v498_v44 }
 0x183   : > { %v2019_v48 = vmax.f32 %v471_v46, %v472_v43 }
 0x184   : > { %v2021_v49 = vadd.f32 %v501_v45, %v500_v47 }
 0x1e2   : > { %v1328_v52 = vpop.f32.mrb[0].mxu1 }
 0x1e3   : > { %v583_v53 = vpop.f32.mrb[1].mxu1  ;;  %v645_v59 = vmul.f32 %v1328_v52, %v1955_v50  ;;  %v616_v0 = vsel %vm314_vm2, %v1328_v52, -1e+30 }
 0x1e4   : > { %v643_v54 = vmul.f32 %v1957_v51, %v583_v53  ;;  %v1329_v57 = vpop.f32.mrb[2].mxu1  ;;  %v614_v2 = vsel %vm312_vm3, %v583_v53, -1e+30  ;;  %v624_v8 = vsel %vm458_vm1, %v616_v0, -inf }
 0x1e5   : > { %v586_v58 = vpop.f32.mrb[3].mxu1  ;;  %v617_v4 = vsel %vm315_vm4, %v1329_v57, -1e+30  ;;  %v646_v5 = vmul.f32 %v1329_v57, %v1959_v55  ;;  %v654_v9 = vsel %vm458_vm1, %v645_v59, 0.0  ;;  %v622_v10 = vsel %vm458_vm1, %v614_v2, -inf }
 0x1e6   : > { %v644_v60 = vmul.f32 %v1961_v56, %v586_v58  ;;  %v651_v3 = vsel %vm458_vm1, %v643_v54, 0.0  ;;  %v625_v12 = vsel %vm458_vm1, %v617_v4, -inf  ;;  %v615_v13 = vsel %vm313_vm5, %v586_v58, -1e+30 }
 0x1e7   : > { %v656_v17 = vsel %vm458_vm1, %v646_v5, 0.0  ;;  %v623_v35 = vsel %vm458_vm1, %v615_v13, -inf  ;;  %v274_v59 = vlaneseq  ;;  %v1664_v4 = vmov 0.0  }
 0x1e8   : > { %v652_v6 = vsel %vm458_vm1, %v644_v60, 0.0 }
 0x1e9   : > { %v653_v7 = vadd.f32 %v652_v6, %v651_v3  ;;  %vm2064_vm10 = vcmp.lt.s32.totalorder %v274_v59, 256 }
 0x1ea   : > { %v1332_v11 = vpop.f32.mrb[4].mxu1  ;;  %279 = vst.msk [vmem:[#allocation3] sm:$0x3] %vm2064_vm10, %v1664_v4 }
 0x1eb   : > { %v655_v14 = vadd.f32 %v654_v9, %v653_v7  ;;  %v620_v15 = vsel %vm318_vm6, %v1332_v11, -1e+30  ;;  %v599_v16 = vpop.f32.mrb[5].mxu1  ;;  %v649_v23 = vmul.f32 %v1332_v11, %v1966_v61 }
 0x1ec   : > { %v630_v18 = vsel %vm458_vm1, %v620_v15, -inf  ;;  %v618_v19 = vsel %vm316_vm7, %v599_v16, -1e+30  ;;  %v647_v20 = vmul.f32 %v1968_v62, %v599_v16  ;;  %v1333_v21 = vpop.f32.mrb[6].mxu1 }
 0x1ed   : > { %v631_v22 = vmax.f32 %v624_v8, %v630_v18  ;;  %v626_v24 = vsel %vm458_vm1, %v618_v19, -inf  ;;  %v657_v25 = vadd.f32 %v656_v17, %v655_v14  ;;  %v602_v26 = vpop.f32.mrb[7].mxu1  ;;  %v621_v29 = vsel %vm319_vm8, %v1333_v21, -1e+30 }
 0x1ee   : > { %v627_v27 = vmax.f32 %v622_v10, %v626_v24  ;;  %v658_v28 = vsel %vm458_vm1, %v647_v20, 0.0  ;;  %v650_v30 = vmul.f32 %v1333_v21, %v1970_v63  ;;  %v632_v32 = vsel %vm458_vm1, %v621_v29, -inf }
 0x1ef   : > { %v659_v31 = vadd.f32 %v658_v28, %v657_v25  ;;  %v619_v33 = vsel %vm317_vm9, %v602_v26, -1e+30  ;;  %v648_v34 = vmul.f32 %v1972_v1, %v602_v26  ;;  %v633_v36 = vmax.f32 %v625_v12, %v632_v32 }
 0x1f0   : > { %v628_v37 = vsel %vm458_vm1, %v619_v33, -inf  ;;  %v662_v38 = vsel %vm458_vm1, %v649_v23, 0.0  ;;  %v664_v43 = vsel %vm458_vm1, %v650_v30, 0.0 }
 0x1f1   : > { %v629_v39 = vmax.f32 %v623_v35, %v628_v37  ;;  %v660_v40 = vsel %vm458_vm1, %v648_v34, 0.0  ;;  %v635_v41 = vmax.f32 %v631_v22, %v633_v36 }
 0x1f2   : > { %v661_v42 = vadd.f32 %v660_v40, %v659_v31 }
 0x1f3   : > { %v634_v44 = vmax.f32 %v627_v27, %v629_v39 }
 0x1f4   : > { %v663_v45 = vadd.f32 %v662_v38, %v661_v42 }
 0x1f5   : > { %v636_v46 = vmax.f32 %v634_v44, %v635_v41 }
 0x1f6   : > { %v665_v47 = vadd.f32 %v664_v43, %v663_v45 }
 0x1f7   : > { %v637_v52 = vrot.slane %v636_v46, 4 }
 0x1f8   : > { %v666_v53 = vrot.slane %v665_v47, 4 }
 0x1f9   : > { %v638_v54 = vmax.f32 %v636_v46, %v637_v52 }
 0x1fa   : > { %v667_v57 = vadd.f32 %v666_v53, %v665_v47 }
 0x1fb   : > { %v639_v58 = vrot.slane %v638_v54, 2 }
 0x1fc   : > { %v668_v60 = vrot.slane %v667_v57, 2 }
 0x1fd   : > { %v640_v0 = vmax.f32 %v638_v54, %v639_v58 }
 0x1fe   : > { %v669_v3 = vadd.f32 %v668_v60, %v667_v57 }
 0x1ff   : > { %v641_v6 = vrot.slane %v640_v0, 1 }
 0x200   : > { %v670_v5 = vrot.slane %v669_v3, 1 }
 0x201   : > { %v642_v20 = vmax.f32 %v640_v0, %v641_v6 }
 0x202   : > { %v1360_v7 = vpop.f32.mrb[8].mxu1  ;;  %v671_v8 = vadd.f32 %v670_v5, %v669_v3 }
 0x203   : > { %v942_v9 = vsel %vm314_vm2, %v1360_v7, -1e+30  ;;  %v971_v10 = vmul.f32 %v1360_v7, %v1955_v50  ;;  %v909_v11 = vpop.f32.mrb[9].mxu1  ;;  %v1344_v12 = vpop.f32.mrb[8].mxu0 }
 0x204   : > { %v2074_v13 = vsel %vm458_vm1, %v942_v9, -inf  ;;  %1035 = vrot.lane.b32.xlu0 %v671_v8, %s1663_s18  ;;  %v940_v14 = vsel %vm312_vm3, %v909_v11, -1e+30  ;;  %v969_v15 = vmul.f32 %v1957_v51, %v909_v11  ;;  %v1361_v16 = vpop.f32.mrb[10].mxu1  ;;  %v779_v21 = vsel %vm314_vm2, %v1344_v12, -1e+30 }
 0x205   : > { %v943_v17 = vsel %vm315_vm4, %v1361_v16, -1e+30  ;;  %v972_v18 = vmul.f32 %v1361_v16, %v1959_v55  ;;  %v912_v19 = vpop.f32.mrb[11].mxu1  ;;  %v746_v22 = vpop.f32.mrb[9].mxu0  ;;  %v980_v23 = vsel %vm458_vm1, %v971_v10, 0.0  ;;  %v2087_v24 = vsel %vm458_vm1, %v940_v14, -inf }
 0x206   : > { %v941_v25 = vsel %vm313_vm5, %v912_v19, -1e+30  ;;  %v970_v26 = vmul.f32 %v1961_v56, %v912_v19  ;;  %v1345_v27 = vpop.f32.mrb[10].mxu0  ;;  %v977_v28 = vsel %vm458_vm1, %v969_v15, 0.0  ;;  %v951_v29 = vsel %vm458_vm1, %v943_v17, -inf }
 0x207   : > { %v982_v30 = vsel %vm458_vm1, %v972_v18, 0.0  ;;  %v808_v31 = vmul.f32 %v1344_v12, %v1955_v50  ;;  %v749_v32 = vpop.f32.mrb[11].mxu0  ;;  %v777_v34 = vsel %vm312_vm3, %v746_v22, -1e+30  ;;  %v806_v35 = vmul.f32 %v1957_v51, %v746_v22 }
 0x208   : > { %v978_v33 = vsel %vm458_vm1, %v970_v26, 0.0  ;;  %1000 = vrot.lane.b32.xlu0 %v642_v20, %s1663_s18  ;;  %v780_v36 = vsel %vm315_vm4, %v1345_v27, -1e+30  ;;  %v949_v37 = vsel %vm458_vm1, %v941_v25, -inf  ;;  %v2105_v39 = vsel %vm458_vm1, %v779_v21, -inf }
 0x209   : > { %v979_v38 = vadd.f32 %v978_v33, %v977_v28  ;;  %v817_v50 = vsel %vm458_vm1, %v808_v31, 0.0  ;;  %v2109_v41 = vsel %vm458_vm1, %v777_v34, -inf  ;;  %v2112_v42 = vsel %vm458_vm1, %v780_v36, -inf }
 0x20a   : > { %v1364_v40 = vpop.f32.mrb[12].mxu1  ;;  %v809_v51 = vmul.f32 %v1345_v27, %v1959_v55  ;;  %v778_v43 = vsel %vm313_vm5, %v749_v32, -1e+30  ;;  %v814_v47 = vsel %vm458_vm1, %v806_v35, 0.0  ;;  %v807_v52 = vmul.f32 %v1961_v56, %v749_v32 }
 0x20b   : > { %v981_v44 = vadd.f32 %v980_v23, %v979_v38  ;;  %v946_v45 = vsel %vm318_vm6, %v1364_v40, -1e+30  ;;  %v925_v46 = vpop.f32.mrb[13].mxu1  ;;  %v1348_v53 = vpop.f32.mrb[12].mxu0  ;;  %v975_v57 = vmul.f32 %v1364_v40, %v1966_v61  ;;  %v786_v56 = vsel %vm458_vm1, %v778_v43, -inf }
 0x20c   : > { %v956_v54 = vsel %vm458_vm1, %v946_v45, -inf  ;;  %v944_v55 = vsel %vm316_vm7, %v925_v46, -1e+30  ;;  %v973_v58 = vmul.f32 %v1968_v62, %v925_v46  ;;  %v1365_v60 = vpop.f32.mrb[14].mxu1  ;;  %v762_v0 = vpop.f32.mrb[13].mxu0  ;;  %v819_v11 = vsel %vm458_vm1, %v809_v51, 0.0 }
 0x20d   : > { %v957_v3 = vmax.f32 %v2074_v13, %v956_v54  ;;  %v952_v4 = vsel %vm458_vm1, %v944_v55, -inf  ;;  %v983_v5 = vadd.f32 %v982_v30, %v981_v44  ;;  %v928_v6 = vpop.f32.mrb[15].mxu1  ;;  %v1349_v7 = vpop.f32.mrb[14].mxu0  ;;  %v947_v10 = vsel %vm319_vm8, %v1365_v60, -1e+30 }
 0x20e   : > { %v953_v8 = vmax.f32 %v2087_v24, %v952_v4  ;;  %v984_v9 = vsel %vm458_vm1, %v973_v58, 0.0  ;;  %v765_v12 = vpop.f32.mrb[15].mxu0  ;;  %v958_v13 = vsel %vm458_vm1, %v947_v10, -inf  ;;  %v945_v15 = vsel %vm317_vm9, %v928_v6, -1e+30 }
 0x20f   : > { %v985_v14 = vadd.f32 %v984_v9, %v983_v5  ;;  %v974_v16 = vmul.f32 %v1972_v1, %v928_v6  ;;  %v959_v17 = vmax.f32 %v951_v29, %v958_v13  ;;  %v976_v18 = vmul.f32 %v1365_v60, %v1970_v63 }
 0x210   : > { %v954_v19 = vsel %vm458_vm1, %v945_v15, -inf  ;;  %v815_v20 = vsel %vm458_vm1, %v807_v52, 0.0  ;;  %v783_v24 = vsel %vm318_vm6, %v1348_v53, -1e+30  ;;  %v988_v25 = vsel %vm458_vm1, %v975_v57, 0.0 }
 0x211   : > { %v955_v21 = vmax.f32 %v949_v37, %v954_v19  ;;  %v986_v22 = vsel %vm458_vm1, %v974_v16, 0.0  ;;  %v816_v23 = vadd.f32 %v815_v20, %v814_v47  ;;  %v961_v26 = vmax.f32 %v957_v3, %v959_v17 }
 0x212   : > { %v987_v27 = vadd.f32 %v986_v22, %v985_v14  ;;  %v793_v28 = vsel %vm458_vm1, %v783_v24, -inf  ;;  %v781_v32 = vsel %vm316_vm7, %v762_v0, -1e+30  ;;  %v990_v33 = vsel %vm458_vm1, %v976_v18, 0.0 }
 0x213   : > { %v960_v29 = vmax.f32 %v953_v8, %v955_v21  ;;  %v818_v30 = vadd.f32 %v817_v50, %v816_v23  ;;  %v794_v31 = vmax.f32 %v2105_v39, %v793_v28  ;;  %v789_v35 = vsel %vm458_vm1, %v781_v32, -inf }
 0x214   : > { %v989_v34 = vadd.f32 %v988_v25, %v987_v27  ;;  %v810_v36 = vmul.f32 %v1968_v62, %v762_v0  ;;  %v790_v38 = vmax.f32 %v2109_v41, %v789_v35  ;;  %v784_v51 = vsel %vm319_vm8, %v1349_v7, -1e+30 }
 0x215   : > { %v962_v37 = vmax.f32 %v960_v29, %v961_v26  ;;  %v820_v40 = vadd.f32 %v819_v11, %v818_v30  ;;  %v812_v39 = vmul.f32 %v1348_v53, %v1966_v61  ;;  %v795_v44 = vsel %vm458_vm1, %v784_v51, -inf }
 0x216   : > { %v991_v50 = vadd.f32 %v990_v33, %v989_v34  ;;  %v821_v43 = vsel %vm458_vm1, %v810_v36, 0.0  ;;  %v796_v47 = vmax.f32 %v2112_v42, %v795_v44  ;;  %v782_v62 = vsel %vm317_vm9, %v765_v12, -1e+30 }
 0x217   : > { %v963_v45 = vrot.slane %v962_v37, 4  ;;  %v822_v46 = vadd.f32 %v821_v43, %v820_v40  ;;  %v813_v41 = vmul.f32 %v1349_v7, %v1970_v63  ;;  %v791_v54 = vsel %vm458_vm1, %v782_v62, -inf }
 0x218   : > { %v992_v52 = vrot.slane %v991_v50, 4  ;;  %v811_v57 = vmul.f32 %v1972_v1, %v765_v12  ;;  %v798_v61 = vmax.f32 %v794_v31, %v796_v47  ;;  %v792_v53 = vmax.f32 %v786_v56, %v791_v54 }
 0x219   : > { %v964_v55 = vmax.f32 %v962_v37, %v963_v45  ;;  %v825_v60 = vsel %vm458_vm1, %v812_v39, 0.0  ;;  %v1665_v3 = vmov -1e+30   ;;  %v827_v6 = vsel %vm458_vm1, %v813_v41, 0.0 }
 0x21a   : > { %v993_v58 = vadd.f32 %v992_v52, %v991_v50  ;;  %v823_v0 = vsel %vm458_vm1, %v811_v57, 0.0  ;;  %278 = vst.msk [vmem:[#allocation2] sm:$0x3] %vm2064_vm10, %v1665_v3  ;;  %v797_v4 = vmax.f32 %v790_v38, %v792_v53  ;;  %v503_v13 = vrot.slane %v2021_v49, 4  ;;  %v1033_v52 = vld [vmem:[#allocation3] sm:$0x3] }
 0x21b   : > { %v965_v42 = vrot.slane %v964_v55, 2  ;;  %v824_v5 = vadd.f32 %v823_v0, %v822_v46  ;;  %v474_v16 = vrot.slane %v2019_v48, 4  ;;  %v1666_v28 = vmov 1966171168  }
 0x21c   : > { %v994_v63 = vrot.slane %v993_v58, 2  ;;  %v799_v7 = vmax.f32 %v797_v4, %v798_v61  ;;  %v504_v19 = vadd.f32 %v503_v13, %v2021_v49  ;;  %v1013_v29 = vunpack.c.l.s4 %v1666_v28 }
 0x21d   : > { %v826_v1 = vadd.f32 %v825_v60, %v824_v5  ;;  %v966_v9 = vmax.f32 %v964_v55, %v965_v42  ;;  %v475_v20 = vmax.f32 %v2019_v48, %v474_v16  ;;  %v1016_v36 = vshrl.u32 %v274_v59, 7 }
 0x21e   : > { %v995_v8 = vadd.f32 %v994_v63, %v993_v58  ;;  %v800_v17 = vrot.slane %v799_v7, 4  ;;  %v505_v22 = vrot.slane %v504_v19, 2  ;;  %v1014_v35 = vunpack.c.0.s8 %v1013_v29 }
 0x21f   : > { %v828_v56 = vadd.f32 %v827_v6, %v826_v1  ;;  %v967_v12 = vrot.slane %v966_v9, 1  ;;  %v476_v25 = vrot.slane %v475_v20, 2 }
 0x220   : > { %v996_v10 = vrot.slane %v995_v8, 1  ;;  %v801_v21 = vmax.f32 %v799_v7, %v800_v17  ;;  %v506_v24 = vadd.f32 %v505_v22, %v504_v19  ;;  %v1017_v40 = vsub.s32 %v1014_v35, %v1016_v36 }
 0x221   : > { %v968_v14 = vmax.f32 %v966_v9, %v967_v12  ;;  %v829_v15 = vrot.slane %v828_v56, 4  ;;  %v477_v31 = vmax.f32 %v475_v20, %v476_v25  ;;  %v998_v53 = vld [vmem:[#allocation2] sm:$0x3] }
 0x222   : > { %v997_v11 = vadd.f32 %v996_v10, %v995_v8  ;;  %v802_v27 = vrot.slane %v801_v21, 2  ;;  %v507_v30 = vrot.slane %v506_v24, 1 }
 0x223   : > { %v830_v18 = vadd.f32 %v829_v15, %v828_v56  ;;  %v478_v37 = vrot.slane %v477_v31, 1 }
 0x224   : > { %1039 = vrot.lane.b32.xlu1 %v997_v11, %s1663_s18  ;;  %v803_v33 = vmax.f32 %v801_v21, %v802_v27  ;;  %v508_v49 = vadd.f32 %v507_v30, %v506_v24 }
 0x225   : > { %v831_v23 = vrot.slane %v830_v18, 2  ;;  %v479_v45 = vmax.f32 %v477_v31, %v478_v37 }
 0x226   : > { %v804_v38 = vrot.slane %v803_v33, 1 }
 0x227   : > { %v832_v26 = vadd.f32 %v831_v23, %v830_v18 }
 0x228   : > { %1004 = vrot.lane.b32.xlu1 %v968_v14, %s1663_s18  ;;  %v805_v46 = vmax.f32 %v803_v33, %v804_v38 }
 0x229   : > { %v833_v32 = vrot.slane %v832_v26, 1 }
 0x22b   : > { %v834_v48 = vadd.f32 %v833_v32, %v832_v26 }
 0x276   : > { %v1036_v34 = vpop.permute.xlu0 %1035 }
 0x277   : > { %v1042_v50 = vsel %vm458_vm1, %v508_v49, %v1036_v34 }
 0x27a   : > { %v1001_v43 = vpop.permute.xlu0 %1000 }
 0x27b   : > { %v1007_v59 = vsel %vm458_vm1, %v479_v45, %v1001_v43 }
 0x296   : > { %v1040_v51 = vpop.permute.xlu1 %1039 }
 0x297   : > { %v1043_v39 = vsel %vm458_vm1, %v834_v48, %v1040_v51 }
 0x298   : > { %v1046_v44 = vcombine.low %v1042_v50, %v1043_v39 }
 0x29a   : > { %v1053_v47 = vrot.slane %v1046_v44, %v1017_v40  ;;  %v1005_v62 = vpop.permute.xlu1 %1004 }
 0x29b   : > { %v1008_v41 = vsel %vm458_vm1, %v805_v46, %v1005_v62 }
 0x29c   : > { %v1060_v54 = vrot.slane %v1053_v47, %v1017_v40  ;;  %v1011_v57 = vcombine.low %v1007_v59, %v1008_v41 }
 0x29e   : > { %v1062_v55 = vadd.f32 %v1060_v54, %v1033_v52  ;;  %v1018_v61 = vrot.slane %v1011_v57, %v1017_v40 }
 0x2a0   : > { %1063 = vst.msk [vmem:[#allocation3] sm:$0x3] %vm2064_vm10, %v1062_v55  ;;  %v1025_v58 = vrot.slane %v1018_v61, %v1017_v40 }
 0x2a2   : > { %v1027_v60 = vmax.f32 %v998_v53, %v1025_v58 }
 0x2a4   : > { %1032 = vst.msk [vmem:[#allocation2] sm:$0x3] %vm2064_vm10, %v1027_v60 }
 0x2a7   : > { %v1068_v0 = vld [vmem:[#allocation3] sm:$0x3] }
 0x2a8   : > { %v1070_v3 = vmul.f32 0.015625, %v1068_v0 }
 0x2ab   : > { %v1067_v42 = vld [vmem:[#allocation2] sm:$0x3] }
 0x2ac   : > { %v1071_v4 = vsub.f32 %v1067_v42, %v1070_v3 }
 0x2ae   : > { %1072 = vst.msk [vmem:[%s266_s27] sm:$0x3] %vm2064_vm10, %v1071_v4 }
 0x2af   : > { %1577 = shalt.err (!%p1574_p8)
}
 0x2b0   : > { %s1578_s19 = scalar_lea.hbm %s2189_s6, 32  ;;  %s1582_s11 = scalar_lea.hbm %s2243_s3, 64 }
 0x2b1   : > { %p1579_p12 = scmp.ne.s32.totalorder %s2189_s6, %s1578_s19  ;;  %p1583_p6 = scmp.lt.u32.totalorder %s2189_s6, %s2243_s3 }
 0x2b2   : > { %p1584_p13 = scmp.lt.u32.totalorder %s1582_s11, %s1578_s19  ;;  %p1586_p5 = scmp.lt.u32.totalorder %s1578_s19, %s2189_s6 }
 0x2b3   : > { %p1580_p11 = pnand %p1579_p12, %p1783_p10 }
 0x2b4   : > { %p1585_p0 = por %p1584_p13, %p1583_p6 }
 0x2b5   : > { %p1581_p3 = pneg %p1580_p11 }
 0x2b6   : > { %p1587_p9 = por %p1586_p5, %p1585_p0 }
 0x2b8   : > { %p1588_p1 = pnand %p1587_p9, %p1581_p3 }
 0x2ba   : > { %1591 = shalt.err (!%p1588_p1)
}
 0x2bb   : > { %1390 = dma.vmem_to_hbm [thread:$0]  (%p1783_p10), %s2191_s28, 32, %s2189_s6, %s1074_s10  }
 0x2bc PF: > { %s1100_s20 = sand.u32 1, %s1634_s12   ;;  %p2271_p2 = scmp.ne.s32.totalorder %s2254_s21, 0 }
 0x2bd   : > { %p2272_p7 = scmp.ge.s32.totalorder %s1654_s17, 2  ;;  %s1101_s18 = scalar_lea.sflag [#allocation6], %s1100_s20 }
 0x2bf   : > { %p1404_p4 = pnand %p2272_p7, %p2271_p2 }
 0x2c1   : > { %1629 = dma.done.wait (!%p1404_p4), %s1101_s18, 32  }
 0x2c2   : > { %1631 = vsyncadd (!%p1404_p4), %s1101_s18, 4294967264  ;;  %s22_s17 = sadd.s32 1, %s1654_s17   ;;  %s2273_s12 = smov %s1638_s13 }
 0x2c3   : > { %p19_p8 = scmp.ge.s32.totalorder %s22_s17, 4   ;;  %s2274_s13 = smov %s1642_s14 }
 0x2c4   : > { %s2275_s14 = smov %s1792_s29  ;;  %s2276_s15 = smov %s1650_s16 }
 0x2c5   : > { %s2277_s16 = smov %s2279_s26  ;;  %21 = sbr.rel (!%p19_p8) target bundleno = 11 (0xb), region = 103 }
 0x2cc   :  { %1106 = vsyncpa [#allocation5], 1 }
 0x2cd   :  { %1108 = vsyncpa [#allocation5 + $0x1], 1 }
 0x2ce   :  { %1109 = vsyncpa [#allocation8], 1 }
 0x2cf   :  { %1111 = vsyncpa [#allocation8 + $0x1], 1 }
 0x2d0   :  { %1112 = vsyncpa [#allocation6], 1 }
 0x2d1   :  { %1114 = vsyncpa [#allocation6 + $0x1], 1 }

</bundles_post_ra>
